<compile_context>
chip_gen: v6e
topology: v6e:2x2x1
jax: 0.10.0
libtpu: 0.0.40
codegen_flags: <defaults>
</compile_context>

<pallas_src>
import functools

import jax
import jax.numpy as jnp
from jax.experimental import pallas as pl
from jax.experimental.pallas import tpu as pltpu


_VMEM_LIMIT_BYTES = 48 * 1024 * 1024    # explicit scoped-VMEM limit (ok on v5e/v6e/v7x)
_VMEM_TILE_BUDGET = 40 * 1024 * 1024    # live-tile budget used by the tile picker


# ----------------------------- Pallas kernels -------------------------------

def _layer1_single_kernel(a_ref, x_ref, w1_ref, b1_ref, wcat_ref, hw_ref):
    """Single-pass layer 1: full (tm, N) A_hat band per row block.
    HW = relu((A_hat @ X) @ W1 + b1) @ [W_mu | W_logstd]  (bf16 out)."""
    ax = jnp.dot(a_ref[...], x_ref[...], preferred_element_type=jnp.float32)
    h = jnp.maximum(
        jnp.dot(ax, w1_ref[...], preferred_element_type=jnp.float32) + b1_ref[...],
        0.0)
    hw_ref[...] = jnp.dot(h, wcat_ref[...],
                          preferred_element_type=jnp.float32).astype(hw_ref.dtype)


def _layer1_acc_kernel(a_ref, x_ref, w1_ref, b1_ref, wcat_ref, hw_ref, acc_ref):
    """K-tiled layer 1: accumulate (A_hat @ X) over K tiles in f32 scratch;
    finalize with W1 + b1 + ReLU and the fused mu|logstd projection."""
    k = pl.program_id(1)

    @pl.when(k == 0)
    def _():
        acc_ref[...] = jnp.zeros_like(acc_ref)

    acc_ref[...] += jnp.dot(a_ref[...], x_ref[...],
                            preferred_element_type=jnp.float32)

    @pl.when(k == pl.num_programs(1) - 1)
    def _():
        h = jnp.maximum(
            jnp.dot(acc_ref[...], w1_ref[...],
                    preferred_element_type=jnp.float32) + b1_ref[...],
            0.0)
        hw_ref[...] = jnp.dot(h, wcat_ref[...],
                              preferred_element_type=jnp.float32).astype(hw_ref.dtype)


def _heads_single_kernel(a_ref, hw_ref, bcat_ref, o_ref):
    """Single-pass head aggregation: A_hat @ HW + [b_mu | b_logstd]."""
    o_ref[...] = (jnp.dot(a_ref[...], hw_ref[...],
                          preferred_element_type=jnp.float32)
                  + bcat_ref[...]).astype(o_ref.dtype)


def _heads_acc_kernel(a_ref, hw_ref, bcat_ref, o_ref):
    """K-tiled head aggregation: accumulate directly into the resident f32
    output block (no scratch); initialize with the broadcast bias at k == 0."""
    k = pl.program_id(1)

    @pl.when(k == 0)
    def _():
        o_ref[...] = jnp.broadcast_to(bcat_ref[...], o_ref.shape)

    o_ref[...] += jnp.dot(a_ref[...], hw_ref[...],
                          preferred_element_type=jnp.float32)


# ------------------------------ Tiling helpers --------------------------------

def _round_up(v, m):
    return ((v + m - 1) // m) * m


def _pick_tiles(n_pad, cin, wcat_c):
    """Pick (tm, tk).  Row tile tm is as large as possible while keeping >= 2
    row blocks (v7x megacore).  Reduction tile tk prefers the full n_pad (no K
    axis) and otherwise the largest divisor tile that fits the VMEM budget."""
    row_cap = n_pad // 2 if n_pad >= 256 else n_pad
    tm = 128
    for cand in (2048, 1024, 512, 256, 128):
        if cand <= row_cap and n_pad % cand == 0:
            tm = cand
            break

    width = max(cin, wcat_c)

    def live_bytes(tk):
        a_buf = 2 * tm * tk * 2                 # A_hat tile, bf16, double-buffered
        band = 2 * tk * width * 2               # X / HW reduction band, bf16, dbl-buf
        acc = tm * cin * 4                      # f32 accumulator (kernel 1, K path)
        outs = 2 * tm * wcat_c * (2 + 4)        # hw (bf16) + out (f32) blocks, dbl-buf
        return a_buf + band + acc + outs + (1 << 20)   # +1 MiB slack (weights etc.)

    tk_cands = [n_pad] + [c for c in (4096, 2048, 1024, 512, 256, 128)
                          if c < n_pad and n_pad % c == 0]
    for tk in tk_cands:
        if live_bytes(tk) <= _VMEM_TILE_BUDGET:
            return tm, tk
    return tm, 128


# ------------------------------ Wrapper --------------------------------------

def vgae_encoder_forward(x, a_hat, params, *, tm=None, tk=None):
    """x: [N, Cin] f32, a_hat: [N_pad, N_pad] (ideally bf16, pre-padded)
    normalized adjacency -> (mu, logstd), each [N, Cout]."""
    n, cin = x.shape
    hid = params["w1"].shape[1]
    cout = params["w_mu"].shape[1]
    wcat_c = 2 * cout

    n_pad = _round_up(n, 128)
    # Fix-ups only if the caller did not prepare A_hat (normalized_adjacency
    # already returns a padded bf16 matrix, so these are normally no-ops).
    if a_hat.dtype != jnp.bfloat16:
        a_hat = a_hat.astype(jnp.bfloat16)
    if a_hat.shape[0] != n_pad:
        a_hat = jnp.pad(a_hat, ((0, n_pad - a_hat.shape[0]),
                                (0, n_pad - a_hat.shape[1])))
    if n_pad != n:
        x = jnp.pad(x, ((0, n_pad - n), (0, 0)))

    auto_tm, auto_tk = _pick_tiles(n_pad, cin, wcat_c)
    tm = auto_tm if tm is None else tm
    tk = auto_tk if tk is None else tk
    assert n_pad % tm == 0 and n_pad % tk == 0

    # bf16 MXU inputs for the N^2 matmuls; small projections stay f32.
    x_bf = x.astype(jnp.bfloat16)
    w1 = params["w1"].astype(jnp.float32)
    b1 = params["b1"].reshape(1, -1).astype(jnp.float32)
    wcat = jnp.concatenate([params["w_mu"], params["w_logstd"]],
                           axis=1).astype(jnp.float32)
    bcat = jnp.concatenate([params["b_mu"], params["b_logstd"]]
                           ).reshape(1, -1).astype(jnp.float32)

    cost1 = pl.CostEstimate(
        flops=2 * n_pad * n_pad * cin
              + 2 * n_pad * cin * hid
              + 2 * n_pad * hid * wcat_c,
        transcendentals=0,
        bytes_accessed=2 * n_pad * n_pad + 2 * n_pad * cin + 2 * n_pad * wcat_c,
    )
    cost2 = pl.CostEstimate(
        flops=2 * n_pad * n_pad * wcat_c,
        transcendentals=0,
        bytes_accessed=2 * n_pad * n_pad + 2 * n_pad * wcat_c + 4 * n_pad * wcat_c,
    )

    if tk == n_pad:
        # ---- no reduction axis: 1-D "parallel" grid, single-pass kernels ----
        grid = (n_pad // tm,)
        cparams = pltpu.CompilerParams(
            dimension_semantics=("parallel",),
            vmem_limit_bytes=_VMEM_LIMIT_BYTES,
        )

        hw = pl.pallas_call(
            _layer1_single_kernel,
            out_shape=jax.ShapeDtypeStruct((n_pad, wcat_c), jnp.bfloat16),
            grid_spec=pltpu.PrefetchScalarGridSpec(
                num_scalar_prefetch=0, grid=grid,
                in_specs=[
                    pl.BlockSpec((tm, n_pad), lambda i: (i, 0)),      # A_hat band
                    pl.BlockSpec((n_pad, cin), lambda i: (0, 0)),     # X (full)
                    pl.BlockSpec((cin, hid), lambda i: (0, 0)),       # W1
                    pl.BlockSpec((1, hid), lambda i: (0, 0)),         # b1
                    pl.BlockSpec((hid, wcat_c), lambda i: (0, 0)),    # [W_mu|W_logstd]
                ],
                out_specs=pl.BlockSpec((tm, wcat_c), lambda i: (i, 0)),
            ),
            compiler_params=cparams,
            cost_estimate=cost1,
        )(a_hat, x_bf, w1, b1, wcat)

        out_slab = pl.pallas_call(
            _heads_single_kernel,
            out_shape=jax.ShapeDtypeStruct((n_pad, wcat_c), jnp.float32),
            grid_spec=pltpu.PrefetchScalarGridSpec(
                num_scalar_prefetch=0, grid=grid,
                in_specs=[
                    pl.BlockSpec((tm, n_pad), lambda i: (i, 0)),      # A_hat band
                    pl.BlockSpec((n_pad, wcat_c), lambda i: (0, 0)),  # HW (full)
                    pl.BlockSpec((1, wcat_c), lambda i: (0, 0)),      # [b_mu|b_logstd]
                ],
                out_specs=pl.BlockSpec((tm, wcat_c), lambda i: (i, 0)),
            ),
            compiler_params=cparams,
            cost_estimate=cost2,
        )(a_hat, hw, bcat)
    else:
        # ---- K-tiled path: 2-D (parallel, arbitrary) grid --------------------
        grid = (n_pad // tm, n_pad // tk)
        cparams = pltpu.CompilerParams(
            dimension_semantics=("parallel", "arbitrary"),
            vmem_limit_bytes=_VMEM_LIMIT_BYTES,
        )

        hw = pl.pallas_call(
            _layer1_acc_kernel,
            out_shape=jax.ShapeDtypeStruct((n_pad, wcat_c), jnp.bfloat16),
            grid_spec=pltpu.PrefetchScalarGridSpec(
                num_scalar_prefetch=0, grid=grid,
                in_specs=[
                    pl.BlockSpec((tm, tk), lambda i, k: (i, k)),      # A_hat tile
                    pl.BlockSpec((tk, cin), lambda i, k: (k, 0)),     # X K-rows
                    pl.BlockSpec((cin, hid), lambda i, k: (0, 0)),    # W1
                    pl.BlockSpec((1, hid), lambda i, k: (0, 0)),      # b1
                    pl.BlockSpec((hid, wcat_c), lambda i, k: (0, 0)), # [W_mu|W_logstd]
                ],
                out_specs=pl.BlockSpec((tm, wcat_c), lambda i, k: (i, 0)),
                scratch_shapes=[pltpu.VMEM((tm, cin), jnp.float32)],
            ),
            compiler_params=cparams,
            cost_estimate=cost1,
        )(a_hat, x_bf, w1, b1, wcat)

        out_slab = pl.pallas_call(
            _heads_acc_kernel,
            out_shape=jax.ShapeDtypeStruct((n_pad, wcat_c), jnp.float32),
            grid_spec=pltpu.PrefetchScalarGridSpec(
                num_scalar_prefetch=0, grid=grid,
                in_specs=[
                    pl.BlockSpec((tm, tk), lambda i, k: (i, k)),      # A_hat tile
                    pl.BlockSpec((tk, wcat_c), lambda i, k: (k, 0)),  # HW K-rows
                    pl.BlockSpec((1, wcat_c), lambda i, k: (0, 0)),   # [b_mu|b_logstd]
                ],
                out_specs=pl.BlockSpec((tm, wcat_c), lambda i, k: (i, 0)),
            ),
            compiler_params=cparams,
            cost_estimate=cost2,
        )(a_hat, hw, bcat)

    mu = out_slab[:n, :cout]
    logstd = out_slab[:n, cout:]
    return mu, logstd


# ----------------------------- Glue (plain JAX) -------------------------------

def normalized_adjacency(edge_index, num_nodes, *, pad_multiple=128,
                         dtype=jnp.bfloat16):
    """A_hat = D^{-1/2} (A + I) D^{-1/2}, PyG GCNConv gcn_norm convention
    (edge_index[0]=source, edge_index[1]=target; duplicate edges summed; self
    loops added only where missing).  Built once in the kernel's MXU dtype and
    pre-padded to the tile multiple so the forward never re-casts or re-pads
    the N x N matrix."""
    src = edge_index[0]
    dst = edge_index[1]
    a = jnp.zeros((num_nodes, num_nodes), jnp.float32)
    a = a.at[dst, src].add(1.0)                                 # message src -> dst
    has_loop = jnp.diag(a) > 0
    a = a + jnp.diag(jnp.where(has_loop, 0.0, 1.0))             # add remaining self loops
    deg = a.sum(axis=1)
    d_inv_sqrt = jnp.where(deg > 0, 1.0 / jnp.sqrt(deg), 0.0)
    a_hat = d_inv_sqrt[:, None] * a * d_inv_sqrt[None, :]
    n_pad = _round_up(num_nodes, pad_multiple)
    if n_pad != num_nodes:
        a_hat = jnp.pad(a_hat, ((0, n_pad - num_nodes), (0, n_pad - num_nodes)))
    return a_hat.astype(dtype)


def glorot(key, fan_in, fan_out):
    limit = jnp.sqrt(6.0 / (fan_in + fan_out))
    return jax.random.uniform(key, (fan_in, fan_out), jnp.float32, -limit, limit)


def init_params(key, in_channels, hidden_channels, out_channels):
    k1, k2, k3 = jax.random.split(key, 3)
    return {
        "w1": glorot(k1, in_channels, hidden_channels),
        "b1": jnp.zeros((hidden_channels,), jnp.float32),
        "w_mu": glorot(k2, hidden_channels, out_channels),
        "b_mu": jnp.zeros((out_channels,), jnp.float32),
        "w_logstd": glorot(k3, hidden_channels, out_channels),
        "b_logstd": jnp.zeros((out_channels,), jnp.float32),
    }


# --------------------------------- Main ---------------------------------------

if __name__ == "__main__":
    N = 256
    IN_CHANNELS = 16
    HIDDEN_CHANNELS = 32
    OUT_CHANNELS = 8

    root = jax.random.PRNGKey(0)
    k_x, k_p = jax.random.split(root)

    x = jax.random.normal(k_x, (N, IN_CHANNELS), jnp.float32)

    idx = jnp.arange(N)
    fwd_e = jnp.stack([idx, (idx + 1) % N])            # i -> i+1
    bwd_e = jnp.stack([(idx + 1) % N, idx])            # i+1 -> i
    edge_index = jnp.concatenate([fwd_e, bwd_e], axis=1)

    a_hat = normalized_adjacency(edge_index, N)        # bf16, padded at construction
    params = init_params(k_p, IN_CHANNELS, HIDDEN_CHANNELS, OUT_CHANNELS)

    # Default tiles at N=256: tm=128 (2 row blocks -> parallel axis exercised),
    # tk=N (no reduction axis -> single-pass kernels).
    encoder = jax.jit(vgae_encoder_forward)
    mu, logstd = encoder(x, a_hat, params)

    # Also exercise the K-accumulation path (tm=tk=128 -> 2x2 grid).
    encoder_kacc = jax.jit(functools.partial(vgae_encoder_forward, tm=128, tk=128))
    mu2, logstd2 = encoder_kacc(x, a_hat, params)

    jax.block_until_ready((mu, logstd, mu2, logstd2))

    # Reference: same math as the PyTorch module, mirroring the kernel's bf16
    # casts on the MXU inputs (full-precision matmuls otherwise).
    with jax.default_matmul_precision("highest"):
        ab = a_hat[:N, :N].astype(jnp.float32)
        xb = x.astype(jnp.bfloat16).astype(jnp.float32)
        h_ref = jnp.maximum((ab @ xb) @ params["w1"] + params["b1"][None, :], 0.0)
        wcat_ref = jnp.concatenate([params["w_mu"], params["w_logstd"]], axis=1)
        bcat_ref = jnp.concatenate([params["b_mu"], params["b_logstd"]])
        hw_ref = (h_ref @ wcat_ref).astype(jnp.bfloat16).astype(jnp.float32)
        out_ref = ab @ hw_ref + bcat_ref[None, :]
    mu_ref = out_ref[:, :OUT_CHANNELS]
    ls_ref = out_ref[:, OUT_CHANNELS:]

    assert mu.shape == (N, OUT_CHANNELS) and logstd.shape == (N, OUT_CHANNELS)
    for m_out, l_out in ((mu, logstd), (mu2, logstd2)):
        assert jnp.allclose(m_out, mu_ref, atol=2e-2, rtol=2e-2)
        assert jnp.allclose(l_out, ls_ref, atol=2e-2, rtol=2e-2)

    print("KERNEL_OK")
</pallas_src>

<mosaic_0001>
module attributes {stable_mosaic.version = 11 : i64} {
  func.func @_heads_single_kernel(%arg0: i32, %arg1: memref<128x256xbf16, #tpu.memory_space<vmem>>, %arg2: memref<256x16xbf16, #tpu.memory_space<vmem>>, %arg3: memref<1x16xf32, #tpu.memory_space<vmem>>, %arg4: memref<128x16xf32, #tpu.memory_space<vmem>>) attributes {dimension_semantics = [#tpu.dimension_semantics<parallel>], iteration_bounds = array<i64: 2>, scalar_prefetch = 0 : i64, scratch_operands = 0 : i64, tpu.core_type = #tpu.core_type<tc>, window_params = [{transform_indices = @transform_0, window_bounds = array<i64: 128, 256>}, {pipeline_mode = #tpu.pipeline_mode<synchronous>, transform_indices = @transform_1, window_bounds = array<i64: 256, 16>}, {pipeline_mode = #tpu.pipeline_mode<synchronous>, transform_indices = @transform_2, window_bounds = array<i64: 1, 16>}, {transform_indices = @transform_3, window_bounds = array<i64: 128, 16>}]} {
    %c0 = arith.constant 0 : index
    %c0_0 = arith.constant 0 : index
    %0 = vector.load %arg1[%c0, %c0_0] : memref<128x256xbf16, #tpu.memory_space<vmem>>, vector<128x256xbf16>
    %c0_1 = arith.constant 0 : index
    %c0_2 = arith.constant 0 : index
    %1 = vector.load %arg2[%c0_1, %c0_2] : memref<256x16xbf16, #tpu.memory_space<vmem>>, vector<256x16xbf16>
    %cst = arith.constant dense<0.000000e+00> : vector<128x16xf32>
    %2 = tpu.matmul %0, %1, %cst {dimension_numbers = #tpu.dot_dimension_numbers<[1], [0], [0], [1], [0, 0, 1, 1], [], []>} : vector<128x256xbf16>, vector<256x16xbf16>, vector<128x16xf32> -> vector<128x16xf32>
    %c0_3 = arith.constant 0 : index
    %c0_4 = arith.constant 0 : index
    %3 = vector.load %arg3[%c0_3, %c0_4] : memref<1x16xf32, #tpu.memory_space<vmem>>, vector<1x16xf32>
    %4 = vector.broadcast %3 : vector<1x16xf32> to vector<128x16xf32>
    %5 = arith.addf %2, %4 : vector<128x16xf32>
    %c0_5 = arith.constant 0 : index
    %c0_6 = arith.constant 0 : index
    %6 = vector.load %arg4[%c0_5, %c0_6] : memref<128x16xf32, #tpu.memory_space<vmem>>, vector<128x16xf32>
    tpu.vector_store %arg4[%c0_5, %c0_6], %5 {strides = array<i32>} : memref<128x16xf32, #tpu.memory_space<vmem>>, vector<128x16xf32>,
    return
  }
  func.func @transform_0(%arg0: i32) -> (i32, i32) {
    %c0_i32 = arith.constant 0 : i32
    %c0_i32_0 = arith.constant 0 : i32
    return %arg0, %c0_i32 : i32, i32
  }
  func.func @transform_1(%arg0: i32) -> (i32, i32) {
    %c0_i32 = arith.constant 0 : i32
    %c0_i32_0 = arith.constant 0 : i32
    %c0_i32_1 = arith.constant 0 : i32
    return %c0_i32, %c0_i32_0 : i32, i32
  }
  func.func @transform_2(%arg0: i32) -> (i32, i32) {
    %c0_i32 = arith.constant 0 : i32
    %c0_i32_0 = arith.constant 0 : i32
    %c0_i32_1 = arith.constant 0 : i32
    return %c0_i32, %c0_i32_0 : i32, i32
  }
  func.func @transform_3(%arg0: i32) -> (i32, i32) {
    %c0_i32 = arith.constant 0 : i32
    %c0_i32_0 = arith.constant 0 : i32
    return %arg0, %c0_i32 : i32, i32
  }
}

module attributes {stable_mosaic.version = 11 : i64} {
  func.func @_layer1_single_kernel(%arg0: i32, %arg1: memref<128x256xbf16, #tpu.memory_space<vmem>>, %arg2: memref<256x16xbf16, #tpu.memory_space<vmem>>, %arg3: memref<16x32xf32, #tpu.memory_space<vmem>>, %arg4: memref<1x32xf32, #tpu.memory_space<vmem>>, %arg5: memref<32x16xf32, #tpu.memory_space<vmem>>, %arg6: memref<128x16xbf16, #tpu.memory_space<vmem>>) attributes {dimension_semantics = [#tpu.dimension_semantics<parallel>], iteration_bounds = array<i64: 2>, scalar_prefetch = 0 : i64, scratch_operands = 0 : i64, tpu.core_type = #tpu.core_type<tc>, window_params = [{transform_indices = @transform_0, window_bounds = array<i64: 128, 256>}, {pipeline_mode = #tpu.pipeline_mode<synchronous>, transform_indices = @transform_1, window_bounds = array<i64: 256, 16>}, {pipeline_mode = #tpu.pipeline_mode<synchronous>, transform_indices = @transform_2, window_bounds = array<i64: 16, 32>}, {pipeline_mode = #tpu.pipeline_mode<synchronous>, transform_indices = @transform_3, window_bounds = array<i64: 1, 32>}, {pipeline_mode = #tpu.pipeline_mode<synchronous>, transform_indices = @transform_4, window_bounds = array<i64: 32, 16>}, {transform_indices = @transform_5, window_bounds = array<i64: 128, 16>}]} {
    %c0 = arith.constant 0 : index
    %c0_0 = arith.constant 0 : index
    %0 = vector.load %arg1[%c0, %c0_0] : memref<128x256xbf16, #tpu.memory_space<vmem>>, vector<128x256xbf16>
    %c0_1 = arith.constant 0 : index
    %c0_2 = arith.constant 0 : index
    %1 = vector.load %arg2[%c0_1, %c0_2] : memref<256x16xbf16, #tpu.memory_space<vmem>>, vector<256x16xbf16>
    %cst = arith.constant dense<0.000000e+00> : vector<128x16xf32>
    %2 = tpu.matmul %0, %1, %cst {dimension_numbers = #tpu.dot_dimension_numbers<[1], [0], [0], [1], [0, 0, 1, 1], [], []>} : vector<128x256xbf16>, vector<256x16xbf16>, vector<128x16xf32> -> vector<128x16xf32>
    %c0_3 = arith.constant 0 : index
    %c0_4 = arith.constant 0 : index
    %3 = vector.load %arg3[%c0_3, %c0_4] : memref<16x32xf32, #tpu.memory_space<vmem>>, vector<16x32xf32>
    %cst_5 = arith.constant dense<0.000000e+00> : vector<128x32xf32>
    %4 = tpu.matmul %2, %3, %cst_5 {dimension_numbers = #tpu.dot_dimension_numbers<[1], [0], [0], [1], [0, 0, 1, 1], [], []>} : vector<128x16xf32>, vector<16x32xf32>, vector<128x32xf32> -> vector<128x32xf32>
    %c0_6 = arith.constant 0 : index
    %c0_7 = arith.constant 0 : index
    %5 = vector.load %arg4[%c0_6, %c0_7] : memref<1x32xf32, #tpu.memory_space<vmem>>, vector<1x32xf32>
    %6 = vector.broadcast %5 : vector<1x32xf32> to vector<128x32xf32>
    %7 = arith.addf %4, %6 : vector<128x32xf32>
    %cst_8 = arith.constant 0.000000e+00 : f32
    %8 = vector.broadcast %cst_8 : f32 to vector<128x32xf32>
    %9 = arith.maximumf %7, %8 : vector<128x32xf32>
    %c0_9 = arith.constant 0 : index
    %c0_10 = arith.constant 0 : index
    %10 = vector.load %arg5[%c0_9, %c0_10] : memref<32x16xf32, #tpu.memory_space<vmem>>, vector<32x16xf32>
    %cst_11 = arith.constant dense<0.000000e+00> : vector<128x16xf32>
    %11 = tpu.matmul %9, %10, %cst_11 {dimension_numbers = #tpu.dot_dimension_numbers<[1], [0], [0], [1], [0, 0, 1, 1], [], []>} : vector<128x32xf32>, vector<32x16xf32>, vector<128x16xf32> -> vector<128x16xf32>
    %12 = arith.truncf %11 : vector<128x16xf32> to vector<128x16xbf16>
    %c0_12 = arith.constant 0 : index
    %c0_13 = arith.constant 0 : index
    %13 = vector.load %arg6[%c0_12, %c0_13] : memref<128x16xbf16, #tpu.memory_space<vmem>>, vector<128x16xbf16>
    tpu.vector_store %arg6[%c0_12, %c0_13], %12 {strides = array<i32>} : memref<128x16xbf16, #tpu.memory_space<vmem>>, vector<128x16xbf16>,
    return
  }
  func.func @transform_0(%arg0: i32) -> (i32, i32) {
    %c0_i32 = arith.constant 0 : i32
    %c0_i32_0 = arith.constant 0 : i32
    return %arg0, %c0_i32 : i32, i32
  }
  func.func @transform_1(%arg0: i32) -> (i32, i32) {
    %c0_i32 = arith.constant 0 : i32
    %c0_i32_0 = arith.constant 0 : i32
    %c0_i32_1 = arith.constant 0 : i32
    return %c0_i32, %c0_i32_0 : i32, i32
  }
  func.func @transform_2(%arg0: i32) -> (i32, i32) {
    %c0_i32 = arith.constant 0 : i32
    %c0_i32_0 = arith.constant 0 : i32
    %c0_i32_1 = arith.constant 0 : i32
    return %c0_i32, %c0_i32_0 : i32, i32
  }
  func.func @transform_3(%arg0: i32) -> (i32, i32) {
    %c0_i32 = arith.constant 0 : i32
    %c0_i32_0 = arith.constant 0 : i32
    %c0_i32_1 = arith.constant 0 : i32
    return %c0_i32, %c0_i32_0 : i32, i32
  }
  func.func @transform_4(%arg0: i32) -> (i32, i32) {
    %c0_i32 = arith.constant 0 : i32
    %c0_i32_0 = arith.constant 0 : i32
    %c0_i32_1 = arith.constant 0 : i32
    return %c0_i32, %c0_i32_0 : i32, i32
  }
  func.func @transform_5(%arg0: i32) -> (i32, i32) {
    %c0_i32 = arith.constant 0 : i32
    %c0_i32_0 = arith.constant 0 : i32
    return %arg0, %c0_i32 : i32, i32
  }
}

</mosaic_0001>

<bundles_post_ra>
// kernel: vgae_encoder_forward.3
= control target key start
LH: loop header
LB: loop body
LE: loop exit
PB: predicated region body
PF: predicated region fallthrough
CT: control target
= control target key end

     0   :  { %s781_s12 = smov 0   ;;  %s926_s0 = inlined_call_operand.vmem [shape: bf16[256,256], index: 0, kind: input, shape index: {}]   ;;  %s927_s1 = inlined_call_operand.vmem [shape: bf16[256,16], index: 1, kind: input, shape index: {}]   ;;  %s928_s2 = inlined_call_operand.vmem [shape: f32[1,16], index: 2, kind: input, shape index: {}]   ;;  %s929_s3 = inlined_call_operand.vmem [shape: f32[256,16], index: 3, kind: output, shape index: {}]  }
   0x1 LB: > { %s579_s13 = sadd.s32 4294967295, %s759_s12   ;;  %p583_p0 = scmp.ge.s32.totalorder %s759_s12, 1  ;;  %s759_s12 = sphi %s781_s12, %s13_s12  }
   0x2   : > { %p139_p1 = scmp.lt.s32.totalorder %s759_s12, 3 }
   0x4   : > { %p140_p2 = pnand %p583_p0, %p139_p1 }
   0x5   : > { %s584_s16 = sshll.u32 (!%p140_p2), %s579_s13, 4 }
   0x6   : > { %143 = sbr.rel (%p140_p2) target bundleno = 272 (0x110), region = 32  ;;  %p165_p3 = scmp.lt.s32.totalorder (!%p140_p2), %s584_s16, 31 }
   0xb   : > { %v713_v0 = vld [vmem:[%s927_s1 + $0x78] sm:$0xff]   ;;  %v715_v2 = vld [vmem:[%s927_s1 + $0x70] sm:$0xff]   ;;  %v717_v4 = vld [vmem:[%s927_s1 + $0x68] sm:$0xff]   ;;  %s931_s16 = smov (!%p165_p3, %s584_s16), 31  ;;  %vm506_vm0 = vcmask 130048  }
   0xc   : > { %v714_v1 = vld [vmem:[%s927_s1 + $0x38] sm:$0xff]   ;;  %625 = vmatprep.subr.bf16.mxu0 %v713_v0  ;;  %689 = vmatprep.subr.bf16.mxu1 %v713_v0  ;;  %v716_v3 = vld [vmem:[%s927_s1 + $0x30] sm:$0xff]   ;;  %v718_v5 = vld [vmem:[%s927_s1 + $0x28] sm:$0xff]   ;;  %s624_s4 = sshll.u32 %s931_s16, 3 }
   0xd   : > { %626 = vmatpush3.bf16.msra.mxu0 %v714_v1  ;;  %697 = vmatpush3.bf16.msra.mxu1 %v714_v1  ;;  %v719_v6 = vld [vmem:[%s927_s1 + $0x60] sm:$0xff]   ;;  %v721_v8 = vld [vmem:[%s927_s1 + $0x58] sm:$0xff]   ;;  %s824_s9 = scalar_lea.vmem %s926_s0, %s624_s4  ;;  %v723_v10 = vld [vmem:[%s927_s1 + $0x50] sm:$0xff]   ;;  %s873_s30 = scalar_lea.vmem %s929_s3, %s624_s4 }
   0xe   : > { %627 = vmatprep.subr.bf16.mxu0 %v715_v2  ;;  %690 = vmatprep.subr.bf16.mxu1 %v715_v2  ;;  %v720_v7 = vld [vmem:[%s927_s1 + $0x20] sm:$0xff]   ;;  %v722_v9 = vld [vmem:[%s927_s1 + $0x18] sm:$0xff]   ;;  %v724_v13 = vld [vmem:[%s927_s1 + $0x10] sm:$0xff]  }
   0xf   : > { %v731_v11 = vld [vmem:[%s824_s9 + $0x4] ss:$8 sps:$4 sm:$0xff]   ;;  %v729_v18 = vld [vmem:[%s824_s9] ss:$8 sps:$4 sm:$0xff]   ;;  %v735_v20 = vld [vmem:[%s824_s9 + $0x14] ss:$8 sps:$4 sm:$0xff]  }
  0x10   : > { %v734_v12 = vld [vmem:[%s824_s9 + $0x44] ss:$8 sps:$4 sm:$0xff]   ;;  %441 = vmatprep.mubr.bf16.mxu0 %v731_v11  ;;  %v732_v19 = vld [vmem:[%s824_s9 + $0x40] ss:$8 sps:$4 sm:$0xff]   ;;  %v737_v21 = vld [vmem:[%s824_s9 + $0x54] ss:$8 sps:$4 sm:$0xff]  }
  0x11   : > { %628 = vmatpush3.bf16.msra.mxu0 %v716_v3  ;;  %698 = vmatpush3.bf16.msra.mxu1 %v716_v3  ;;  %v725_v14 = vld [vmem:[%s927_s1 + $0x48] sm:$0xff]   ;;  %v727_v16 = vld [vmem:[%s927_s1 + $0x40] sm:$0xff]   ;;  %v739_v22 = vld [vmem:[%s824_s9 + $0x10] ss:$8 sps:$4 sm:$0xff]  }
  0x12   : > { %629 = vmatprep.subr.bf16.mxu0 %v717_v4  ;;  %691 = vmatprep.subr.bf16.mxu1 %v717_v4  ;;  %v726_v15 = vld [vmem:[%s927_s1 + $0x8] sm:$0xff]   ;;  %v728_v17 = vld [vmem:[%s927_s1] sm:$0xff]   ;;  %v740_v23 = vld [vmem:[%s824_s9 + $0x50] ss:$8 sps:$4 sm:$0xff]  }
  0x13   : > { %473 = vmatprep.mubr.bf16.mxu1 %v734_v12  ;;  %v741_v24 = vld [vmem:[%s824_s9 + $0x24] ss:$8 sps:$4 sm:$0xff]   ;;  %v745_v26 = vld [vmem:[%s824_s9 + $0x20] ss:$8 sps:$4 sm:$0xff]   ;;  %v747_v28 = vld [vmem:[%s824_s9 + $0x34] ss:$8 sps:$4 sm:$0xff]  }
  0x14   : > { %v743_v25 = vld [vmem:[%s824_s9 + $0x64] ss:$8 sps:$4 sm:$0xff]   ;;  %v746_v27 = vld [vmem:[%s824_s9 + $0x60] ss:$8 sps:$4 sm:$0xff]   ;;  %v749_v29 = vld [vmem:[%s824_s9 + $0x74] ss:$8 sps:$4 sm:$0xff]  }
  0x15   : > { %630 = vmatpush3.bf16.msra.mxu0 %v718_v5  ;;  %699 = vmatpush3.bf16.msra.mxu1 %v718_v5  ;;  %v751_v30 = vld [vmem:[%s824_s9 + $0x30] ss:$8 sps:$4 sm:$0xff]   ;;  %v866_v34 = vld [vmem:[%s928_s2] ss:$0 sm:$0xff] }
  0x16   : > { %631 = vmatprep.subr.bf16.mxu0 %v719_v6  ;;  %692 = vmatprep.subr.bf16.mxu1 %v719_v6  ;;  %v752_v31 = vld [vmem:[%s824_s9 + $0x70] ss:$8 sps:$4 sm:$0xff]  }
  0x19   : > { %632 = vmatpush3.bf16.msra.mxu0 %v720_v7  ;;  %700 = vmatpush3.bf16.msra.mxu1 %v720_v7 }
  0x1a   : > { %633 = vmatprep.subr.bf16.mxu0 %v721_v8  ;;  %693 = vmatprep.subr.bf16.mxu1 %v721_v8 }
  0x1d   : > { %634 = vmatpush3.bf16.msra.mxu0 %v722_v9  ;;  %701 = vmatpush3.bf16.msra.mxu1 %v722_v9 }
  0x1e   : > { %635 = vmatprep.subr.bf16.mxu0 %v723_v10  ;;  %694 = vmatprep.subr.bf16.mxu1 %v723_v10 }
  0x21   : > { %636 = vmatpush3.bf16.msra.mxu0 %v724_v13  ;;  %702 = vmatpush3.bf16.msra.mxu1 %v724_v13 }
  0x22   : > { %637 = vmatprep.subr.bf16.mxu0 %v725_v14  ;;  %695 = vmatprep.subr.bf16.mxu1 %v725_v14 }
  0x25   : > { %638 = vmatpush3.bf16.msra.mxu0 %v726_v15  ;;  %703 = vmatpush3.bf16.msra.mxu1 %v726_v15 }
  0x26   : > { %639 = vmatprep.subr.bf16.mxu0 %v727_v16  ;;  %696 = vmatprep.subr.bf16.mxu1 %v727_v16 }
  0x29   : > { %640 = vmatpush3.bf16.msra.mxu0 %v728_v17  ;;  %704 = vmatpush3.bf16.msra.mxu1 %v728_v17 }
  0x2c   : > { %442 = vmatmul.mubr.bf16.vlgmr.msra.gmra.mxu0 %v729_v18  ;;  %474 = vmatmul.mubr.bf16.vlgmr.msra.gmra.mxu1 %v732_v19 }
  0x2d   : > { %449 = vmatprep.mubr.bf16.mxu0 %v735_v20  ;;  %481 = vmatprep.mubr.bf16.mxu1 %v737_v21 }
  0x34   : > { %450 = vmatmul.mubr.bf16.gmra.mxu0 %v739_v22  ;;  %482 = vmatmul.mubr.bf16.gmra.mxu1 %v740_v23 }
  0x35   : > { %457 = vmatprep.mubr.bf16.mxu0 %v741_v24  ;;  %489 = vmatprep.mubr.bf16.mxu1 %v743_v25 }
  0x3c   : > { %458 = vmatmul.mubr.bf16.gmra.mxu0 %v745_v26  ;;  %490 = vmatmul.mubr.bf16.gmra.mxu1 %v746_v27 }
  0x3d   : > { %465 = vmatprep.mubr.bf16.mxu0 %v747_v28  ;;  %497 = vmatprep.mubr.bf16.mxu1 %v749_v29 }
  0x44   : > { %466 = vmatmul.mubr.bf16.gmra.mxu0 %v751_v30  ;;  %498 = vmatmul.mubr.bf16.gmra.mxu1 %v752_v31 }
  0xec   : > { %v641_v32 = vpop.f32.mrf.mxu0  ;;  %v665_v33 = vpop.f32.mrf.mxu1 }
  0xee   : > { %v642_v35 = vpop.f32.mrf.mxu0  ;;  %v666_v36 = vpop.f32.mrf.mxu1 }
  0xef   : > { %v643_v37 = vadd.f32 %v642_v35, %v641_v32  ;;  %v667_v38 = vadd.f32 %v666_v36, %v665_v33 }
  0xf0   : > { %v644_v39 = vpop.f32.mrf.mxu0  ;;  %v668_v40 = vpop.f32.mrf.mxu1 }
  0xf1   : > { %v444_v41 = vadd.f32 %v643_v37, %v866_v34  ;;  %v476_v42 = vadd.f32 %v667_v38, %v866_v34 }
  0xf2   : > { %v645_v43 = vpop.f32.mrf.mxu0  ;;  %v669_v44 = vpop.f32.mrf.mxu1 }
  0xf3   : > { %507 = vst.msk [vmem:[%s873_s30] sm:$0xff] %vm506_vm0, %v444_v41  ;;  %515 = vst.msk [vmem:[%s873_s30 + $0x40] sm:$0xff] %vm506_vm0, %v476_v42  ;;  %v646_v45 = vadd.f32 %v645_v43, %v644_v39  ;;  %v670_v46 = vadd.f32 %v669_v44, %v668_v40 }
  0xf4   : > { %v647_v47 = vpop.f32.mrf.mxu0  ;;  %v671_v48 = vpop.f32.mrf.mxu1 }
  0xf5   : > { %v447_v49 = vadd.f32 %v646_v45, %v866_v34  ;;  %v479_v50 = vadd.f32 %v670_v46, %v866_v34 }
  0xf6   : > { %v648_v51 = vpop.f32.mrf.mxu0  ;;  %v672_v52 = vpop.f32.mrf.mxu1 }
  0xf7   : > { %508 = vst.msk [vmem:[%s873_s30 + $0x8] sm:$0xff] %vm506_vm0, %v447_v49  ;;  %516 = vst.msk [vmem:[%s873_s30 + $0x48] sm:$0xff] %vm506_vm0, %v479_v50  ;;  %v649_v53 = vadd.f32 %v648_v51, %v647_v47  ;;  %v673_v54 = vadd.f32 %v672_v52, %v671_v48 }
  0xf8   : > { %v650_v55 = vpop.f32.mrf.mxu0  ;;  %v674_v56 = vpop.f32.mrf.mxu1 }
  0xf9   : > { %v452_v57 = vadd.f32 %v649_v53, %v866_v34  ;;  %v484_v58 = vadd.f32 %v673_v54, %v866_v34 }
  0xfa   : > { %v651_v59 = vpop.f32.mrf.mxu0  ;;  %v675_v60 = vpop.f32.mrf.mxu1 }
  0xfb   : > { %509 = vst.msk [vmem:[%s873_s30 + $0x10] sm:$0xff] %vm506_vm0, %v452_v57  ;;  %517 = vst.msk [vmem:[%s873_s30 + $0x50] sm:$0xff] %vm506_vm0, %v484_v58  ;;  %v652_v61 = vadd.f32 %v651_v59, %v650_v55  ;;  %v676_v62 = vadd.f32 %v675_v60, %v674_v56 }
  0xfc   : > { %v653_v63 = vpop.f32.mrf.mxu0  ;;  %v677_v0 = vpop.f32.mrf.mxu1 }
  0xfd   : > { %v455_v1 = vadd.f32 %v652_v61, %v866_v34  ;;  %v487_v2 = vadd.f32 %v676_v62, %v866_v34 }
  0xfe   : > { %v654_v3 = vpop.f32.mrf.mxu0  ;;  %v678_v4 = vpop.f32.mrf.mxu1 }
  0xff   : > { %510 = vst.msk [vmem:[%s873_s30 + $0x18] sm:$0xff] %vm506_vm0, %v455_v1  ;;  %518 = vst.msk [vmem:[%s873_s30 + $0x58] sm:$0xff] %vm506_vm0, %v487_v2  ;;  %v655_v5 = vadd.f32 %v654_v3, %v653_v63  ;;  %v679_v6 = vadd.f32 %v678_v4, %v677_v0 }
 0x100   : > { %v656_v7 = vpop.f32.mrf.mxu0  ;;  %v680_v8 = vpop.f32.mrf.mxu1 }
 0x101   : > { %v460_v9 = vadd.f32 %v655_v5, %v866_v34  ;;  %v492_v10 = vadd.f32 %v679_v6, %v866_v34 }
 0x102   : > { %v657_v11 = vpop.f32.mrf.mxu0  ;;  %v681_v12 = vpop.f32.mrf.mxu1 }
 0x103   : > { %511 = vst.msk [vmem:[%s873_s30 + $0x20] sm:$0xff] %vm506_vm0, %v460_v9  ;;  %519 = vst.msk [vmem:[%s873_s30 + $0x60] sm:$0xff] %vm506_vm0, %v492_v10  ;;  %v658_v13 = vadd.f32 %v657_v11, %v656_v7  ;;  %v682_v14 = vadd.f32 %v681_v12, %v680_v8 }
 0x104   : > { %v659_v15 = vpop.f32.mrf.mxu0  ;;  %v683_v16 = vpop.f32.mrf.mxu1 }
 0x105   : > { %v463_v17 = vadd.f32 %v658_v13, %v866_v34  ;;  %v495_v18 = vadd.f32 %v682_v14, %v866_v34 }
 0x106   : > { %v660_v19 = vpop.f32.mrf.mxu0  ;;  %v684_v20 = vpop.f32.mrf.mxu1 }
 0x107   : > { %512 = vst.msk [vmem:[%s873_s30 + $0x28] sm:$0xff] %vm506_vm0, %v463_v17  ;;  %520 = vst.msk [vmem:[%s873_s30 + $0x68] sm:$0xff] %vm506_vm0, %v495_v18  ;;  %v661_v21 = vadd.f32 %v660_v19, %v659_v15  ;;  %v685_v22 = vadd.f32 %v684_v20, %v683_v16 }
 0x108   : > { %v662_v23 = vpop.f32.mrf.mxu0  ;;  %v686_v24 = vpop.f32.mrf.mxu1 }
 0x109   : > { %v468_v25 = vadd.f32 %v661_v21, %v866_v34  ;;  %v500_v26 = vadd.f32 %v685_v22, %v866_v34 }
 0x10a   : > { %v663_v27 = vpop.f32.mrf.mxu0  ;;  %v687_v28 = vpop.f32.mrf.mxu1 }
 0x10b   : > { %513 = vst.msk [vmem:[%s873_s30 + $0x30] sm:$0xff] %vm506_vm0, %v468_v25  ;;  %521 = vst.msk [vmem:[%s873_s30 + $0x70] sm:$0xff] %vm506_vm0, %v500_v26  ;;  %v664_v29 = vadd.f32 %v663_v27, %v662_v23  ;;  %v688_v30 = vadd.f32 %v687_v28, %v686_v24 }
 0x10d   : > { %v471_v31 = vadd.f32 %v664_v29, %v866_v34  ;;  %v503_v32 = vadd.f32 %v688_v30, %v866_v34 }
 0x10f   : > { %514 = vst.msk [vmem:[%s873_s30 + $0x38] sm:$0xff] %vm506_vm0, %v471_v31  ;;  %522 = vst.msk [vmem:[%s873_s30 + $0x78] sm:$0xff] %vm506_vm0, %v503_v32 }
 0x110 PF: > { %s13_s12 = sadd.s32 1, %s759_s12  }
 0x111   : > { %p10_p4 = scmp.ge.s32.totalorder %s13_s12, 4  }
 0x113   :  { %12 = sbr.rel (!%p10_p4) target bundleno = 1 (0x1), region = 62 }

// kernel: vgae_encoder_forward.2
= control target key start
LH: loop header
LB: loop body
LE: loop exit
PB: predicated region body
PF: predicated region fallthrough
CT: control target
= control target key end

     0   :  { %s1465_s18 = smov 0   ;;  %s1639_s0 = inlined_call_operand.vmem [shape: bf16[256,256], index: 0, kind: input, shape index: {}]   ;;  %s1640_s1 = inlined_call_operand.vmem [shape: bf16[256,16], index: 1, kind: input, shape index: {}]   ;;  %s1641_s2 = inlined_call_operand.vmem [shape: f32[16,32], index: 2, kind: input, shape index: {}]   ;;  %s1642_s3 = inlined_call_operand.vmem [shape: f32[1,32], index: 3, kind: input, shape index: {}]   ;;  %s1643_s4 = inlined_call_operand.vmem [shape: f32[32,16], index: 4, kind: input, shape index: {}]   ;;  %s1644_s5 = inlined_call_operand.vmem [shape: bf16[256,16], index: 5, kind: output, shape index: {}]  }
   0x1 LB: > { %s1107_s19 = sadd.s32 4294967295, %s1433_s18   ;;  %p1111_p0 = scmp.ge.s32.totalorder %s1433_s18, 1  ;;  %s1433_s18 = sphi %s1465_s18, %s15_s18  }
   0x2   : > { %p189_p1 = scmp.lt.s32.totalorder %s1433_s18, 3 }
   0x4   : > { %p190_p2 = pnand %p1111_p0, %p189_p1 }
   0x5   : > { %s1112_s22 = sshll.u32 (!%p190_p2), %s1107_s19, 4 }
   0x6   : > { %193 = sbr.rel (%p190_p2) target bundleno = 699 (0x2bb), region = 40  ;;  %p219_p3 = scmp.lt.s32.totalorder (!%p190_p2), %s1112_s22, 31 }
   0xb   : > { %v1387_v0 = vld [vmem:[%s1640_s1 + $0x78] sm:$0xff]   ;;  %v1389_v2 = vld [vmem:[%s1640_s1 + $0x70] sm:$0xff]   ;;  %v1391_v4 = vld [vmem:[%s1640_s1 + $0x68] sm:$0xff]   ;;  %s1646_s22 = smov (!%p219_p3, %s1112_s22), 31  ;;  %vm562_vm0 = vcmask 130048   ;;  %vm776_vm1 = vcmask 261120  }
   0xc   : > { %v1388_v1 = vld [vmem:[%s1640_s1 + $0x38] sm:$0xff]   ;;  %1217 = vmatprep.subr.bf16.mxu0 %v1387_v0  ;;  %v1390_v3 = vld [vmem:[%s1640_s1 + $0x30] sm:$0xff]   ;;  %v1392_v5 = vld [vmem:[%s1640_s1 + $0x28] sm:$0xff]   ;;  %s1200_s12 = sshll.u32 %s1646_s22, 3  ;;  %s1116_s25 = sshll.u32 %s1646_s22, 2  ;;  %vm1034_vm2 = vcmask 125952  }
   0xd   : > { %1218 = vmatpush3.bf16.msra.mxu0 %v1388_v1  ;;  %v1393_v6 = vld [vmem:[%s1640_s1 + $0x60] sm:$0xff]   ;;  %v1395_v8 = vld [vmem:[%s1640_s1 + $0x58] sm:$0xff]   ;;  %s1506_s17 = scalar_lea.vmem %s1639_s0, %s1200_s12  ;;  %v1397_v10 = vld [vmem:[%s1640_s1 + $0x50] sm:$0xff]   ;;  %s1602_s28 = scalar_lea.vmem %s1644_s5, %s1116_s25 }
   0xe   : > { %1219 = vmatprep.subr.bf16.mxu0 %v1389_v2  ;;  %v1394_v7 = vld [vmem:[%s1640_s1 + $0x20] sm:$0xff]   ;;  %v1396_v9 = vld [vmem:[%s1640_s1 + $0x18] sm:$0xff]   ;;  %v1398_v12 = vld [vmem:[%s1640_s1 + $0x10] sm:$0xff]  }
   0xf   : > { %v1405_v11 = vld [vmem:[%s1506_s17 + $0x4] ss:$8 sps:$4 sm:$0xff]   ;;  %v1403_v17 = vld [vmem:[%s1506_s17] ss:$8 sps:$4 sm:$0xff]   ;;  %v1406_v18 = vld [vmem:[%s1506_s17 + $0x14] ss:$8 sps:$4 sm:$0xff]  }
  0x10   : > { %488 = vmatprep.mubr.bf16.mxu0 %v1405_v11  ;;  %v1399_v13 = vld [vmem:[%s1640_s1 + $0x48] sm:$0xff]   ;;  %v1401_v15 = vld [vmem:[%s1640_s1 + $0x40] sm:$0xff]   ;;  %v1408_v19 = vld [vmem:[%s1506_s17 + $0x10] ss:$8 sps:$4 sm:$0xff]  }
  0x11   : > { %1220 = vmatpush3.bf16.msra.mxu0 %v1390_v3  ;;  %v1400_v14 = vld [vmem:[%s1640_s1 + $0x8] sm:$0xff]   ;;  %v1402_v16 = vld [vmem:[%s1640_s1] sm:$0xff]   ;;  %v1412_v22 = vld [vmem:[%s1506_s17 + $0x34] ss:$8 sps:$4 sm:$0xff]  }
  0x12   : > { %1221 = vmatprep.subr.bf16.mxu0 %v1391_v4  ;;  %v1409_v20 = vld [vmem:[%s1506_s17 + $0x24] ss:$8 sps:$4 sm:$0xff]   ;;  %v1411_v21 = vld [vmem:[%s1506_s17 + $0x20] ss:$8 sps:$4 sm:$0xff]   ;;  %v1414_v23 = vld [vmem:[%s1506_s17 + $0x30] ss:$8 sps:$4 sm:$0xff]  }
  0x13   : > { %v1415_v24 = vld [vmem:[%s1506_s17 + $0x44] ss:$8 sps:$4 sm:$0xff]   ;;  %v1417_v25 = vld [vmem:[%s1506_s17 + $0x40] ss:$8 sps:$4 sm:$0xff]   ;;  %v1418_v26 = vld [vmem:[%s1506_s17 + $0x54] ss:$8 sps:$4 sm:$0xff]  }
  0x14   : > { %v1420_v27 = vld [vmem:[%s1506_s17 + $0x50] ss:$8 sps:$4 sm:$0xff]   ;;  %v1421_v28 = vld [vmem:[%s1506_s17 + $0x64] ss:$8 sps:$4 sm:$0xff]   ;;  %v1423_v29 = vld [vmem:[%s1506_s17 + $0x60] ss:$8 sps:$4 sm:$0xff]  }
  0x15   : > { %1222 = vmatpush3.bf16.msra.mxu0 %v1392_v5  ;;  %v1424_v30 = vld [vmem:[%s1506_s17 + $0x74] ss:$8 sps:$4 sm:$0xff]   ;;  %v1426_v31 = vld [vmem:[%s1506_s17 + $0x70] ss:$8 sps:$4 sm:$0xff]   ;;  %v554_v32 = vld [vmem:[%s1641_s2 + $0x8] sm:$0xff] }
  0x16   : > { %1223 = vmatprep.subr.bf16.mxu0 %v1393_v6  ;;  %1319 = vmatprep.subr.mxu1 %v554_v32  ;;  %v553_v33 = vld [vmem:[%s1641_s2] sm:$0xff] }
  0x17   : > { %1320 = vmatpush3.msra.mxu1 %v554_v32 }
  0x18   : > { %1321 = vmatprep.subr.mxu1 %v553_v33 }
  0x19   : > { %1224 = vmatpush3.bf16.msra.mxu0 %v1394_v7  ;;  %1322 = vmatpush3.msra.mxu1 %v553_v33 }
  0x1a   : > { %1225 = vmatprep.subr.bf16.mxu0 %v1395_v8 }
  0x1d   : > { %1226 = vmatpush3.bf16.msra.mxu0 %v1396_v9 }
  0x1e   : > { %1227 = vmatprep.subr.bf16.mxu0 %v1397_v10 }
  0x21   : > { %1228 = vmatpush3.bf16.msra.mxu0 %v1398_v12 }
  0x22   : > { %1229 = vmatprep.subr.bf16.mxu0 %v1399_v13 }
  0x25   : > { %1230 = vmatpush3.bf16.msra.mxu0 %v1400_v14 }
  0x26   : > { %1231 = vmatprep.subr.bf16.mxu0 %v1401_v15 }
  0x29   : > { %1232 = vmatpush3.bf16.msra.mxu0 %v1402_v16 }
  0x2c   : > { %489 = vmatmul.mubr.bf16.vlgmr.msra.gmra.mxu0 %v1403_v17 }
  0x2d   : > { %496 = vmatprep.mubr.bf16.mxu0 %v1406_v18  ;;  %v775_v18 = vld [vmem:[%s1643_s4 + $0x18] sm:$0xff] }
  0x2e   : > { %1347 = vmatprep.subr.mxu1 %v775_v18 }
  0x34   : > { %497 = vmatmul.mubr.bf16.gmra.mxu0 %v1408_v19  ;;  %v774_v19 = vld [vmem:[%s1643_s4 + $0x10] sm:$0xff] }
  0x35   : > { %504 = vmatprep.mubr.bf16.mxu0 %v1409_v20  ;;  %v773_v20 = vld [vmem:[%s1643_s4 + $0x8] sm:$0xff] }
  0x3c   : > { %505 = vmatmul.mubr.bf16.gmra.mxu0 %v1411_v21  ;;  %v772_v21 = vld [vmem:[%s1643_s4] sm:$0xff] }
  0x3d   : > { %512 = vmatprep.mubr.bf16.mxu0 %v1412_v22  ;;  %v1149_v22 = vld [vmem:[%s1642_s3] ss:$0 sm:$0xff] }
  0x44   : > { %513 = vmatmul.mubr.bf16.gmra.mxu0 %v1414_v23 }
  0x45   : > { %520 = vmatprep.mubr.bf16.mxu0 %v1415_v24 }
  0x4c   : > { %521 = vmatmul.mubr.bf16.gmra.mxu0 %v1417_v25 }
  0x4d   : > { %528 = vmatprep.mubr.bf16.mxu0 %v1418_v26 }
  0x54   : > { %529 = vmatmul.mubr.bf16.gmra.mxu0 %v1420_v27 }
  0x55   : > { %536 = vmatprep.mubr.bf16.mxu0 %v1421_v28 }
  0x5c   : > { %537 = vmatmul.mubr.bf16.gmra.mxu0 %v1423_v29 }
  0x5d   : > { %544 = vmatprep.mubr.bf16.mxu0 %v1424_v30 }
  0x64   : > { %545 = vmatmul.mubr.bf16.gmra.mxu0 %v1426_v31 }
  0xec   : > { %v1233_v34 = vpop.f32.mrf.mxu0 }
  0xee   : > { %v1234_v35 = vpop.f32.mrf.mxu0 }
  0xef   : > { %v1235_v36 = vadd.f32 %v1234_v35, %v1233_v34 }
  0xf0   : > { %v1236_v37 = vpop.f32.mrf.mxu0 }
  0xf1   : > { %1323 = vmatprep.mubr.msk.f32.mxu1 %vm562_vm0, %v1235_v36 }
  0xf2   : > { %v1237_v38 = vpop.f32.mrf.mxu0 }
  0xf3   : > { %v1238_v39 = vadd.f32 %v1237_v38, %v1236_v37 }
  0xf4   : > { %v1239_v40 = vpop.f32.mrf.mxu0 }
  0xf5   : > { %1324 = vmatmul.mubr.msk.f32.vlgmr.msra.gmra.mxu1 %vm562_vm0, %v1238_v39 }
  0xf6   : > { %v1240_v41 = vpop.f32.mrf.mxu0  ;;  %1348 = vmatpush3.msra.mxu1 %v775_v18 }
  0xf7   : > { %v1241_v42 = vadd.f32 %v1240_v41, %v1239_v40  ;;  %1349 = vmatprep.subr.mxu1 %v774_v19 }
  0xf8   : > { %v1242_v43 = vpop.f32.mrf.mxu0  ;;  %1350 = vmatpush3.msra.mxu1 %v774_v19 }
  0xf9   : > { %1326 = vmatprep.mubr.msk.f32.mxu1 %vm562_vm0, %v1241_v42  ;;  %1351 = vmatprep.subr.mxu1 %v773_v20 }
  0xfa   : > { %v1243_v44 = vpop.f32.mrf.mxu0  ;;  %1352 = vmatpush3.msra.mxu1 %v773_v20 }
  0xfb   : > { %v1244_v45 = vadd.f32 %v1243_v44, %v1242_v43  ;;  %1353 = vmatprep.subr.mxu1 %v772_v21 }
  0xfc   : > { %v1245_v46 = vpop.f32.mrf.mxu0  ;;  %1354 = vmatpush3.msra.mxu1 %v772_v21 }
  0xfd   : > { %1327 = vmatmul.mubr.msk.f32.gmra.mxu1 %vm562_vm0, %v1244_v45 }
  0xfe   : > { %v1246_v47 = vpop.f32.mrf.mxu0 }
  0xff   : > { %v1247_v48 = vadd.f32 %v1246_v47, %v1245_v46 }
 0x100   : > { %v1248_v49 = vpop.f32.mrf.mxu0 }
 0x101   : > { %1329 = vmatprep.mubr.msk.f32.mxu1 %vm562_vm0, %v1247_v48 }
 0x102   : > { %v1249_v50 = vpop.f32.mrf.mxu0 }
 0x103   : > { %v1250_v51 = vadd.f32 %v1249_v50, %v1248_v49 }
 0x104   : > { %v1251_v52 = vpop.f32.mrf.mxu0 }
 0x105   : > { %1330 = vmatmul.mubr.msk.f32.gmra.mxu1 %vm562_vm0, %v1250_v51 }
 0x106   : > { %v1252_v53 = vpop.f32.mrf.mxu0 }
 0x107   : > { %v1253_v54 = vadd.f32 %v1252_v53, %v1251_v52 }
 0x108   : > { %v1254_v55 = vpop.f32.mrf.mxu0 }
 0x109   : > { %1332 = vmatprep.mubr.msk.f32.mxu1 %vm562_vm0, %v1253_v54 }
 0x10a   : > { %v1255_v56 = vpop.f32.mrf.mxu0 }
 0x10b   : > { %v1256_v57 = vadd.f32 %v1255_v56, %v1254_v55 }
 0x10c   : > { %v1257_v58 = vpop.f32.mrf.mxu0 }
 0x10d   : > { %1333 = vmatmul.mubr.msk.f32.gmra.mxu1 %vm562_vm0, %v1256_v57 }
 0x10e   : > { %v1258_v59 = vpop.f32.mrf.mxu0 }
 0x10f   : > { %v1259_v60 = vadd.f32 %v1258_v59, %v1257_v58 }
 0x110   : > { %v1260_v61 = vpop.f32.mrf.mxu0 }
 0x111   : > { %1335 = vmatprep.mubr.msk.f32.mxu1 %vm562_vm0, %v1259_v60 }
 0x112   : > { %v1261_v62 = vpop.f32.mrf.mxu0 }
 0x113   : > { %v1262_v63 = vadd.f32 %v1261_v62, %v1260_v61 }
 0x114   : > { %v1263_v0 = vpop.f32.mrf.mxu0 }
 0x115   : > { %1336 = vmatmul.mubr.msk.f32.gmra.mxu1 %vm562_vm0, %v1262_v63 }
 0x116   : > { %v1264_v1 = vpop.f32.mrf.mxu0 }
 0x117   : > { %v1265_v2 = vadd.f32 %v1264_v1, %v1263_v0 }
 0x118   : > { %v1266_v3 = vpop.f32.mrf.mxu0 }
 0x119   : > { %1338 = vmatprep.mubr.msk.f32.mxu1 %vm562_vm0, %v1265_v2 }
 0x11a   : > { %v1267_v4 = vpop.f32.mrf.mxu0 }
 0x11b   : > { %v1268_v5 = vadd.f32 %v1267_v4, %v1266_v3 }
 0x11c   : > { %v1269_v6 = vpop.f32.mrf.mxu0 }
 0x11d   : > { %1339 = vmatmul.mubr.msk.f32.gmra.mxu1 %vm562_vm0, %v1268_v5 }
 0x11e   : > { %v1270_v7 = vpop.f32.mrf.mxu0 }
 0x11f   : > { %v1271_v8 = vadd.f32 %v1270_v7, %v1269_v6 }
 0x120   : > { %v1272_v9 = vpop.f32.mrf.mxu0 }
 0x121   : > { %1341 = vmatprep.mubr.msk.f32.mxu1 %vm562_vm0, %v1271_v8 }
 0x122   : > { %v1273_v10 = vpop.f32.mrf.mxu0 }
 0x123   : > { %v1274_v11 = vadd.f32 %v1273_v10, %v1272_v9 }
 0x124   : > { %v1275_v12 = vpop.f32.mrf.mxu0 }
 0x125   : > { %1342 = vmatmul.mubr.msk.f32.gmra.mxu1 %vm562_vm0, %v1274_v11 }
 0x126   : > { %v1276_v13 = vpop.f32.mrf.mxu0 }
 0x127   : > { %v1277_v14 = vadd.f32 %v1276_v13, %v1275_v12 }
 0x128   : > { %v1278_v15 = vpop.f32.mrf.mxu0 }
 0x129   : > { %1344 = vmatprep.mubr.msk.f32.mxu1 %vm562_vm0, %v1277_v14 }
 0x12a   : > { %v1279_v16 = vpop.f32.mrf.mxu0 }
 0x12b   : > { %v1280_v17 = vadd.f32 %v1279_v16, %v1278_v15 }
 0x12d   : > { %1345 = vmatmul.mubr.msk.f32.gmra.mxu1 %vm562_vm0, %v1280_v17 }
 0x1b5   : > { %v1325_v23 = vpop.f32.mrf.mxu1 }
 0x1b6   : > { %v683_v24 = vadd.f32 %v1325_v23, %v1149_v22 }
 0x1b7   : > { %v677_v25 = vpop.f32.mrf.mxu1 }
 0x1b8   : > { %v678_v26 = vadd.f32 %v1149_v22, %v677_v25  ;;  %v757_v28 = vmax.f32 %v683_v24, 0.0 }
 0x1ba   : > { %v756_v27 = vmax.f32 %v678_v26, 0.0 }
 0x1bc   : > { %1355 = vmatprep.mubr.msk.f32.mxu1 %vm776_vm1, %v756_v27 }
 0x1bd   : > { %v1328_v29 = vpop.f32.mrf.mxu1  ;;  %1356 = vmatmul.mubr.msk.f32.vlgmr.msra.gmra.mxu1 %vm776_vm1, %v757_v28 }
 0x1be   : > { %v693_v30 = vadd.f32 %v1328_v29, %v1149_v22 }
 0x1bf   : > { %v687_v31 = vpop.f32.mrf.mxu1 }
 0x1c0   : > { %v688_v32 = vadd.f32 %v1149_v22, %v687_v31  ;;  %v759_v34 = vmax.f32 %v693_v30, 0.0 }
 0x1c2   : > { %v758_v33 = vmax.f32 %v688_v32, 0.0 }
 0x1c4   : > { %1358 = vmatprep.mubr.msk.f32.mxu1 %vm776_vm1, %v758_v33 }
 0x1c5   : > { %v1331_v35 = vpop.f32.mrf.mxu1  ;;  %1359 = vmatmul.mubr.msk.f32.gmra.mxu1 %vm776_vm1, %v759_v34 }
 0x1c6   : > { %v703_v36 = vadd.f32 %v1331_v35, %v1149_v22 }
 0x1c7   : > { %v697_v37 = vpop.f32.mrf.mxu1 }
 0x1c8   : > { %v698_v38 = vadd.f32 %v1149_v22, %v697_v37  ;;  %v761_v40 = vmax.f32 %v703_v36, 0.0 }
 0x1ca   : > { %v760_v39 = vmax.f32 %v698_v38, 0.0 }
 0x1cc   : > { %1361 = vmatprep.mubr.msk.f32.mxu1 %vm776_vm1, %v760_v39 }
 0x1cd   : > { %v1334_v41 = vpop.f32.mrf.mxu1  ;;  %1362 = vmatmul.mubr.msk.f32.gmra.mxu1 %vm776_vm1, %v761_v40 }
 0x1ce   : > { %v713_v42 = vadd.f32 %v1334_v41, %v1149_v22 }
 0x1cf   : > { %v707_v43 = vpop.f32.mrf.mxu1 }
 0x1d0   : > { %v708_v44 = vadd.f32 %v1149_v22, %v707_v43  ;;  %v763_v46 = vmax.f32 %v713_v42, 0.0 }
 0x1d2   : > { %v762_v45 = vmax.f32 %v708_v44, 0.0 }
 0x1d4   : > { %1364 = vmatprep.mubr.msk.f32.mxu1 %vm776_vm1, %v762_v45 }
 0x1d5   : > { %v1337_v47 = vpop.f32.mrf.mxu1  ;;  %1365 = vmatmul.mubr.msk.f32.gmra.mxu1 %vm776_vm1, %v763_v46 }
 0x1d6   : > { %v723_v48 = vadd.f32 %v1337_v47, %v1149_v22 }
 0x1d7   : > { %v717_v49 = vpop.f32.mrf.mxu1 }
 0x1d8   : > { %v718_v50 = vadd.f32 %v1149_v22, %v717_v49  ;;  %v765_v52 = vmax.f32 %v723_v48, 0.0 }
 0x1da   : > { %v764_v51 = vmax.f32 %v718_v50, 0.0 }
 0x1dc   : > { %1367 = vmatprep.mubr.msk.f32.mxu1 %vm776_vm1, %v764_v51 }
 0x1dd   : > { %v1340_v53 = vpop.f32.mrf.mxu1  ;;  %1368 = vmatmul.mubr.msk.f32.gmra.mxu1 %vm776_vm1, %v765_v52 }
 0x1de   : > { %v733_v54 = vadd.f32 %v1340_v53, %v1149_v22 }
 0x1df   : > { %v727_v55 = vpop.f32.mrf.mxu1 }
 0x1e0   : > { %v728_v56 = vadd.f32 %v1149_v22, %v727_v55  ;;  %v767_v58 = vmax.f32 %v733_v54, 0.0 }
 0x1e2   : > { %v766_v57 = vmax.f32 %v728_v56, 0.0 }
 0x1e4   : > { %1370 = vmatprep.mubr.msk.f32.mxu1 %vm776_vm1, %v766_v57 }
 0x1e5   : > { %v1343_v59 = vpop.f32.mrf.mxu1  ;;  %1371 = vmatmul.mubr.msk.f32.gmra.mxu1 %vm776_vm1, %v767_v58 }
 0x1e6   : > { %v743_v60 = vadd.f32 %v1343_v59, %v1149_v22 }
 0x1e7   : > { %v737_v61 = vpop.f32.mrf.mxu1 }
 0x1e8   : > { %v738_v62 = vadd.f32 %v1149_v22, %v737_v61  ;;  %v769_v0 = vmax.f32 %v743_v60, 0.0 }
 0x1ea   : > { %v768_v63 = vmax.f32 %v738_v62, 0.0 }
 0x1ec   : > { %1373 = vmatprep.mubr.msk.f32.mxu1 %vm776_vm1, %v768_v63 }
 0x1ed   : > { %v1346_v1 = vpop.f32.mrf.mxu1  ;;  %1374 = vmatmul.mubr.msk.f32.gmra.mxu1 %vm776_vm1, %v769_v0 }
 0x1ee   : > { %v753_v2 = vadd.f32 %v1346_v1, %v1149_v22 }
 0x1ef   : > { %v747_v3 = vpop.f32.mrf.mxu1 }
 0x1f0   : > { %v748_v4 = vadd.f32 %v1149_v22, %v747_v3  ;;  %v771_v6 = vmax.f32 %v753_v2, 0.0 }
 0x1f2   : > { %v770_v5 = vmax.f32 %v748_v4, 0.0 }
 0x1f4   : > { %1376 = vmatprep.mubr.msk.f32.mxu1 %vm776_vm1, %v770_v5 }
 0x1f5   : > { %1377 = vmatmul.mubr.msk.f32.gmra.mxu1 %vm776_vm1, %v771_v6 }
 0x27d   : > { %v1357_v7 = vpop.f32.mrf.mxu1 }
 0x27e   : > { %v1202_v8 = vpack.c.bf16 %v1357_v7, %v1357_v7 }
 0x27f   : > { %v891_v9 = vpop.f32.mrf.mxu1 }
 0x280   : > { %1036 = vst.msk [vmem:[%s1602_s28 + $0x4] sm:$0xf] %vm1034_vm2, %v1202_v8  ;;  %v1201_v10 = vpack.c.bf16 %v891_v9, %v891_v9 }
 0x282   : > { %1035 = vst.msk [vmem:[%s1602_s28] sm:$0xf] %vm1034_vm2, %v1201_v10 }
 0x285   : > { %v1360_v11 = vpop.f32.mrf.mxu1 }
 0x286   : > { %v1204_v12 = vpack.c.bf16 %v1360_v11, %v1360_v11 }
 0x287   : > { %v901_v13 = vpop.f32.mrf.mxu1 }
 0x288   : > { %1038 = vst.msk [vmem:[%s1602_s28 + $0xc] sm:$0xf] %vm1034_vm2, %v1204_v12  ;;  %v1203_v14 = vpack.c.bf16 %v901_v13, %v901_v13 }
 0x28a   : > { %1037 = vst.msk [vmem:[%s1602_s28 + $0x8] sm:$0xf] %vm1034_vm2, %v1203_v14 }
 0x28d   : > { %v1363_v15 = vpop.f32.mrf.mxu1 }
 0x28e   : > { %v1206_v16 = vpack.c.bf16 %v1363_v15, %v1363_v15 }
 0x28f   : > { %v911_v17 = vpop.f32.mrf.mxu1 }
 0x290   : > { %1040 = vst.msk [vmem:[%s1602_s28 + $0x14] sm:$0xf] %vm1034_vm2, %v1206_v16  ;;  %v1205_v18 = vpack.c.bf16 %v911_v17, %v911_v17 }
 0x292   : > { %1039 = vst.msk [vmem:[%s1602_s28 + $0x10] sm:$0xf] %vm1034_vm2, %v1205_v18 }
 0x295   : > { %v1366_v19 = vpop.f32.mrf.mxu1 }
 0x296   : > { %v1208_v20 = vpack.c.bf16 %v1366_v19, %v1366_v19 }
 0x297   : > { %v921_v21 = vpop.f32.mrf.mxu1 }
 0x298   : > { %1042 = vst.msk [vmem:[%s1602_s28 + $0x1c] sm:$0xf] %vm1034_vm2, %v1208_v20  ;;  %v1207_v22 = vpack.c.bf16 %v921_v21, %v921_v21 }
 0x29a   : > { %1041 = vst.msk [vmem:[%s1602_s28 + $0x18] sm:$0xf] %vm1034_vm2, %v1207_v22 }
 0x29d   : > { %v1369_v23 = vpop.f32.mrf.mxu1 }
 0x29e   : > { %v1210_v24 = vpack.c.bf16 %v1369_v23, %v1369_v23 }
 0x29f   : > { %v931_v25 = vpop.f32.mrf.mxu1 }
 0x2a0   : > { %1044 = vst.msk [vmem:[%s1602_s28 + $0x24] sm:$0xf] %vm1034_vm2, %v1210_v24  ;;  %v1209_v26 = vpack.c.bf16 %v931_v25, %v931_v25 }
 0x2a2   : > { %1043 = vst.msk [vmem:[%s1602_s28 + $0x20] sm:$0xf] %vm1034_vm2, %v1209_v26 }
 0x2a5   : > { %v1372_v27 = vpop.f32.mrf.mxu1 }
 0x2a6   : > { %v1212_v28 = vpack.c.bf16 %v1372_v27, %v1372_v27 }
 0x2a7   : > { %v941_v29 = vpop.f32.mrf.mxu1 }
 0x2a8   : > { %1046 = vst.msk [vmem:[%s1602_s28 + $0x2c] sm:$0xf] %vm1034_vm2, %v1212_v28  ;;  %v1211_v30 = vpack.c.bf16 %v941_v29, %v941_v29 }
 0x2aa   : > { %1045 = vst.msk [vmem:[%s1602_s28 + $0x28] sm:$0xf] %vm1034_vm2, %v1211_v30 }
 0x2ad   : > { %v1375_v31 = vpop.f32.mrf.mxu1 }
 0x2ae   : > { %v1214_v32 = vpack.c.bf16 %v1375_v31, %v1375_v31 }
 0x2af   : > { %v951_v33 = vpop.f32.mrf.mxu1 }
 0x2b0   : > { %1048 = vst.msk [vmem:[%s1602_s28 + $0x34] sm:$0xf] %vm1034_vm2, %v1214_v32  ;;  %v1213_v34 = vpack.c.bf16 %v951_v33, %v951_v33 }
 0x2b2   : > { %1047 = vst.msk [vmem:[%s1602_s28 + $0x30] sm:$0xf] %vm1034_vm2, %v1213_v34 }
 0x2b5   : > { %v1378_v35 = vpop.f32.mrf.mxu1 }
 0x2b6   : > { %v1216_v36 = vpack.c.bf16 %v1378_v35, %v1378_v35 }
 0x2b7   : > { %v961_v37 = vpop.f32.mrf.mxu1 }
 0x2b8   : > { %1050 = vst.msk [vmem:[%s1602_s28 + $0x3c] sm:$0xf] %vm1034_vm2, %v1216_v36  ;;  %v1215_v38 = vpack.c.bf16 %v961_v37, %v961_v37 }
 0x2ba   : > { %1049 = vst.msk [vmem:[%s1602_s28 + $0x38] sm:$0xf] %vm1034_vm2, %v1215_v38 }
 0x2bb PF: > { %s15_s18 = sadd.s32 1, %s1433_s18  }
 0x2bc   : > { %p12_p4 = scmp.ge.s32.totalorder %s15_s18, 4  }
 0x2be   :  { %14 = sbr.rel (!%p12_p4) target bundleno = 1 (0x1), region = 70 }

</bundles_post_ra>
